<compile_context>
chip_gen: v5e
topology: v5e:2x2
jax: 0.10.0
libtpu: 0.0.40
codegen_flags: <defaults>
</compile_context>

<pallas_src>
from typing import NamedTuple, Optional

import jax
import jax.numpy as jnp
from jax.experimental import pallas as pl
from jax.experimental.pallas import tpu as pltpu


def _round_up(n: int, m: int) -> int:
    return ((n + m - 1) // m) * m


def _sublane(dtype) -> int:
    # Minimum row granularity for dense (unmasked) vreg packing.
    return {4: 8, 2: 16, 1: 32}[jnp.dtype(dtype).itemsize]


_DEF_TB = 1024             # batch tile (rows)
_DEF_TC = 256              # class tile (lanes; fills v6e/v7x 256-wide MXU)
_DEF_TK = 1024             # contraction tile (256-multiples when D is chunked)
_VMEM_LIMIT = 32 * 1024 * 1024   # safe on v5e/v6e (128 MiB) and v7x (64 MiB)


def _plan_param_tiles(in_features: int, num_classes: int, tc: int, tk: int):
    # Class (lane) tile: multiple of 128, padded lane-dense.
    tc = min(_round_up(tc, 128), _round_up(num_classes, 128))
    cp = _round_up(num_classes, tc)
    # Contraction tile: keep D whole if it fits one tile (then no D padding at
    # all), otherwise chunk in 256-multiples and accumulate over the k axis.
    if in_features <= tk:
        tk, dp = in_features, in_features
    else:
        tk = _round_up(tk, 256)
        dp = _round_up(in_features, tk)
    return tc, cp, tk, dp


class LinearSigmoidParams(NamedTuple):
    w_t: jax.Array       # (Dp, Cp)  weight, transposed + padded, compute dtype
    bias2d: jax.Array    # (1, Cp)   bias, padded, float32
    num_classes: int
    in_features: int
    tc: int
    tk: int


def prepare_params(weight, bias, *, tc: int = _DEF_TC, tk: int = _DEF_TK,
                   compute_dtype: Optional[jnp.dtype] = None
                   ) -> LinearSigmoidParams:
    """One-time HBM-side parameter prep (hoisted out of the per-call path).

    weight: (C, D) in torch.nn.Linear layout, bias: (C,).
    Casts to `compute_dtype` (bf16 recommended for production), transposes to
    (D, C) and pads to tile-aligned lane-dense shapes.
    """
    num_classes, in_features = weight.shape
    assert bias.shape == (num_classes,)
    tc, cp, tk, dp = _plan_param_tiles(in_features, num_classes, tc, tk)

    w = weight if compute_dtype is None else weight.astype(compute_dtype)
    w_t = w.T                                   # (D, C): plain (K, N) MXU feed
    if (dp, cp) != (in_features, num_classes):
        w_t = jnp.pad(w_t, ((0, dp - in_features), (0, cp - num_classes)))
    bias2d = jnp.pad(bias.astype(jnp.float32),
                     (0, cp - num_classes)).reshape(1, cp)
    return LinearSigmoidParams(w_t, bias2d, num_classes, in_features, tc, tk)


def _kernel_acc_in_out(x_ref, w_ref, b_ref, o_ref):
    """f32 output: accumulate directly into the resident output block."""
    k = pl.program_id(2)

    @pl.when(k == 0)
    def _init():
        o_ref[...] = jnp.zeros_like(o_ref)

    o_ref[...] += jnp.dot(x_ref[...], w_ref[...],
                          preferred_element_type=jnp.float32)

    @pl.when(k == pl.num_programs(2) - 1)
    def _finalize():
        logits = o_ref[...] + b_ref[...]
        # Exact sigmoid (matches PyTorch); once per output tile, not per K step.
        o_ref[...] = 1.0 / (1.0 + jnp.exp(-logits))


def _kernel_acc_scratch(x_ref, w_ref, b_ref, o_ref, acc_ref):
    """Non-f32 output: keep an f32 accumulator scratch."""
    k = pl.program_id(2)

    @pl.when(k == 0)
    def _init():
        acc_ref[...] = jnp.zeros_like(acc_ref)

    acc_ref[...] += jnp.dot(x_ref[...], w_ref[...],
                            preferred_element_type=jnp.float32)

    @pl.when(k == pl.num_programs(2) - 1)
    def _finalize():
        logits = acc_ref[...] + b_ref[...]
        o_ref[...] = (1.0 / (1.0 + jnp.exp(-logits))).astype(o_ref.dtype)


def linear_sigmoid(x, params: LinearSigmoidParams, *, tb: int = _DEF_TB):
    """sigmoid(x @ weight.T + bias) with pre-prepared params.

    x: (B, D).  Returns (B, C) in x's dtype.
    """
    B, D = x.shape
    assert D == params.in_features, (D, params.in_features)
    dp, cp = params.w_t.shape
    tc, tk = params.tc, params.tk
    out_dtype = x.dtype
    compute_dtype = params.w_t.dtype
    if x.dtype != compute_dtype:
        x = x.astype(compute_dtype)

    sub = _sublane(compute_dtype)
    # Maximize the batch tile: weight HBM traffic = (Bp/tb) * C * D * bytes,
    # so one batch block => the (C, D) weight is streamed exactly once.
    tb = min(_round_up(tb, sub), _round_up(B, sub))
    bp = _round_up(B, tb)

    # v7x has 2 TensorCores: keep >= 2 blocks on a "parallel" grid axis so the
    # second core isn't idle when the grid would otherwise be (1, 1, K).
    if bp // tb == 1 and cp // tc == 1 and (tb // 2) % sub == 0 and tb // 2 > 0:
        tb //= 2

    if (bp, dp) != (B, D):
        x = jnp.pad(x, ((0, bp - B), (0, dp - D)))

    grid = (bp // tb, cp // tc, dp // tk)
    f32_out = out_dtype == jnp.float32
    kernel = _kernel_acc_in_out if f32_out else _kernel_acc_scratch
    scratch = [] if f32_out else [pltpu.VMEM((tb, tc), jnp.float32)]

    out = pl.pallas_call(
        kernel,
        out_shape=jax.ShapeDtypeStruct((bp, cp), out_dtype),
        grid_spec=pltpu.PrefetchScalarGridSpec(
            num_scalar_prefetch=0,
            grid=grid,
            in_specs=[
                pl.BlockSpec((tb, tk), lambda i, j, k: (i, k)),   # x
                pl.BlockSpec((tk, tc), lambda i, j, k: (k, j)),   # weight.T
                pl.BlockSpec((1, tc), lambda i, j, k: (0, j)),    # bias
            ],
            out_specs=pl.BlockSpec((tb, tc), lambda i, j, k: (i, j)),
            scratch_shapes=scratch,
        ),
        compiler_params=pltpu.CompilerParams(
            dimension_semantics=("parallel", "parallel", "arbitrary"),
            vmem_limit_bytes=_VMEM_LIMIT),
    )(x, params.w_t, params.bias2d)

    return out[:B, :params.num_classes]


def model_forward(x, weight, bias, *, compute_dtype=None):
    """Convenience wrapper mirroring Model.forward (prep done per call)."""
    params = prepare_params(weight, bias, compute_dtype=compute_dtype)
    return linear_sigmoid(x, params)


if __name__ == "__main__":
    key = jax.random.PRNGKey(0)
    batch = 8
    input_size = 32
    num_classes = 4

    kx, kw, kb = jax.random.split(key, 3)
    x = jax.random.normal(kx, (batch, input_size), dtype=jnp.float32)
    # Deterministic init mimicking nn.Linear default (uniform +/- 1/sqrt(D)).
    bound = 1.0 / jnp.sqrt(jnp.float32(input_size))
    weight = jax.random.uniform(kw, (num_classes, input_size),
                                dtype=jnp.float32, minval=-bound, maxval=bound)
    bias = jax.random.uniform(kb, (num_classes,),
                              dtype=jnp.float32, minval=-bound, maxval=bound)

    # Parameter prep happens once (outside the per-call path), then the kernel.
    params = prepare_params(weight, bias)        # compute_dtype=jnp.bfloat16 in prod
    y = linear_sigmoid(x, params)
    y = jax.block_until_ready(y)

    # Reference in plain JAX at highest matmul precision. The sigmoid is exact
    # now; the small tolerance only covers the MXU's f32 pass decomposition.
    logits_ref = jnp.dot(x, weight.T, precision=jax.lax.Precision.HIGHEST) + bias
    ref = jax.nn.sigmoid(logits_ref)
    assert y.shape == ref.shape, (y.shape, ref.shape)
    max_err = float(jnp.max(jnp.abs(y - ref)))
    assert max_err < 2e-3, f"max abs err {max_err}"
    print("KERNEL_OK")
</pallas_src>

<mosaic_0001>
module attributes {stable_mosaic.version = 11 : i64} {
  func.func @_kernel_acc_in_out(%arg0: i32, %arg1: i32, %arg2: i32, %arg3: memref<8x32xf32, #tpu.memory_space<vmem>>, %arg4: memref<32x128xf32, #tpu.memory_space<vmem>>, %arg5: memref<1x128xf32, #tpu.memory_space<vmem>>, %arg6: memref<8x128xf32, #tpu.memory_space<vmem>>) attributes {dimension_semantics = [#tpu.dimension_semantics<parallel>, #tpu.dimension_semantics<parallel>, #tpu.dimension_semantics<arbitrary>], iteration_bounds = array<i64: 1, 1, 1>, scalar_prefetch = 0 : i64, scratch_operands = 0 : i64, tpu.core_type = #tpu.core_type<tc>, window_params = [{transform_indices = @transform_0, window_bounds = array<i64: 8, 32>}, {transform_indices = @transform_1, window_bounds = array<i64: 32, 128>}, {transform_indices = @transform_2, window_bounds = array<i64: 1, 128>}, {transform_indices = @transform_3, window_bounds = array<i64: 8, 128>}]} {
    %c0_i32 = arith.constant 0 : i32
    %0 = arith.cmpi eq, %arg2, %c0_i32 : i32
    %1 = arith.extui %0 : i1 to i32
    %c0_i32_0 = arith.constant 0 : i32
    %2 = arith.cmpi ne, %1, %c0_i32_0 : i32
    scf.if %2 {
      %cst_10 = arith.constant 0.000000e+00 : f32
      %12 = vector.broadcast %cst_10 : f32 to vector<8x128xf32>
      %c0_11 = arith.constant 0 : index
      %c0_12 = arith.constant 0 : index
      %13 = vector.load %arg6[%c0_11, %c0_12] : memref<8x128xf32, #tpu.memory_space<vmem>>, vector<8x128xf32>
      tpu.vector_store %arg6[%c0_11, %c0_12], %12 {strides = array<i32>} : memref<8x128xf32, #tpu.memory_space<vmem>>, vector<8x128xf32>,
    } else {
    }
    %c0 = arith.constant 0 : index
    %c0_1 = arith.constant 0 : index
    %3 = vector.load %arg6[%c0, %c0_1] : memref<8x128xf32, #tpu.memory_space<vmem>>, vector<8x128xf32>
    %c0_2 = arith.constant 0 : index
    %c0_3 = arith.constant 0 : index
    %4 = vector.load %arg3[%c0_2, %c0_3] : memref<8x32xf32, #tpu.memory_space<vmem>>, vector<8x32xf32>
    %c0_4 = arith.constant 0 : index
    %c0_5 = arith.constant 0 : index
    %5 = vector.load %arg4[%c0_4, %c0_5] : memref<32x128xf32, #tpu.memory_space<vmem>>, vector<32x128xf32>
    %cst = arith.constant dense<0.000000e+00> : vector<8x128xf32>
    %6 = tpu.matmul %4, %5, %cst {dimension_numbers = #tpu.dot_dimension_numbers<[1], [0], [0], [1], [0, 0, 1, 1], [], []>} : vector<8x32xf32>, vector<32x128xf32>, vector<8x128xf32> -> vector<8x128xf32>
    %7 = arith.addf %3, %6 : vector<8x128xf32>
    %c0_6 = arith.constant 0 : index
    %c0_7 = arith.constant 0 : index
    %8 = vector.load %arg6[%c0_6, %c0_7] : memref<8x128xf32, #tpu.memory_space<vmem>>, vector<8x128xf32>
    tpu.vector_store %arg6[%c0_6, %c0_7], %7 {strides = array<i32>} : memref<8x128xf32, #tpu.memory_space<vmem>>, vector<8x128xf32>,
    %c0_i32_8 = arith.constant 0 : i32
    %9 = arith.cmpi eq, %arg2, %c0_i32_8 : i32
    %10 = arith.extui %9 : i1 to i32
    %c0_i32_9 = arith.constant 0 : i32
    %11 = arith.cmpi ne, %10, %c0_i32_9 : i32
    scf.if %11 {
      %c0_10 = arith.constant 0 : index
      %c0_11 = arith.constant 0 : index
      %12 = vector.load %arg6[%c0_10, %c0_11] : memref<8x128xf32, #tpu.memory_space<vmem>>, vector<8x128xf32>
      %c0_12 = arith.constant 0 : index
      %c0_13 = arith.constant 0 : index
      %13 = vector.load %arg5[%c0_12, %c0_13] : memref<1x128xf32, #tpu.memory_space<vmem>>, vector<1x128xf32>
      %14 = vector.broadcast %13 : vector<1x128xf32> to vector<8x128xf32>
      %15 = arith.addf %12, %14 : vector<8x128xf32>
      %cst_14 = arith.constant 0.000000e+00 : f32
      %16 = vector.broadcast %cst_14 : f32 to vector<8x128xf32>
      %17 = arith.subf %16, %15 : vector<8x128xf32>
      %18 = math.exp %17 : vector<8x128xf32>
      %cst_15 = arith.constant 1.000000e+00 : f32
      %19 = vector.broadcast %cst_15 : f32 to vector<8x128xf32>
      %20 = arith.addf %19, %18 : vector<8x128xf32>
      %cst_16 = arith.constant 1.000000e+00 : f32
      %21 = vector.broadcast %cst_16 : f32 to vector<8x128xf32>
      %22 = arith.divf %21, %20 : vector<8x128xf32>
      %c0_17 = arith.constant 0 : index
      %c0_18 = arith.constant 0 : index
      %23 = vector.load %arg6[%c0_17, %c0_18] : memref<8x128xf32, #tpu.memory_space<vmem>>, vector<8x128xf32>
      tpu.vector_store %arg6[%c0_17, %c0_18], %22 {strides = array<i32>} : memref<8x128xf32, #tpu.memory_space<vmem>>, vector<8x128xf32>,
    } else {
    }
    return
  }
  func.func @transform_0(%arg0: i32, %arg1: i32, %arg2: i32) -> (i32, i32) {
    %c0_i32 = arith.constant 0 : i32
    return %arg0, %arg2 : i32, i32
  }
  func.func @transform_1(%arg0: i32, %arg1: i32, %arg2: i32) -> (i32, i32) {
    %c0_i32 = arith.constant 0 : i32
    return %arg2, %arg1 : i32, i32
  }
  func.func @transform_2(%arg0: i32, %arg1: i32, %arg2: i32) -> (i32, i32) {
    %c0_i32 = arith.constant 0 : i32
    %c0_i32_0 = arith.constant 0 : i32
    return %c0_i32, %arg1 : i32, i32
  }
  func.func @transform_3(%arg0: i32, %arg1: i32, %arg2: i32) -> (i32, i32) {
    %c0_i32 = arith.constant 0 : i32
    return %arg0, %arg1 : i32, i32
  }
}

</mosaic_0001>

<bundles_post_ra>
// kernel: tpu_custom_call.1
= control target key start
LH: loop header
LB: loop body
LE: loop exit
PB: predicated region body
PF: predicated region fallthrough
CT: control target
= control target key end

     0   :  { %8 = vsyncpa [#allocation3], 0  ;;  %s256_s0 = inlined_call_operand.hbm [shape: f32[8,32], index: 0, kind: input, shape index: {}]   ;;  %s257_s1 = inlined_call_operand.hbm [shape: f32[32,128], index: 1, kind: input, shape index: {}]   ;;  %s258_s2 = inlined_call_operand.vmem [shape: f32[1,128], index: 2, kind: input, shape index: {}]   ;;  %s259_s3 = inlined_call_operand.hbm [shape: f32[8,128], index: 3, kind: output, shape index: {}]  }
   0x1   :  { %9 = vsyncpa [#allocation6], 0 }
   0x2   :  { %10 = vsyncpa [#allocation4], 0  ;;  %s16_s14 = sshll.u32 %s256_s0, 4  ;;  %s219_s15 = smov [#allocation2]   ;;  %s17_s14 = int_to_ptr.hbm [resolvable:$true] %s16_s14 }
   0x3   :  { %s18_s16 = sshll.u32 %s219_s15, 4  ;;  %s26_s19 = sshll.u32 %s257_s1, 4  ;;  %s19_s16 = int_to_ptr.vmem [resolvable:$true] %s18_s16  ;;  %s27_s19 = int_to_ptr.hbm [resolvable:$true] %s26_s19 }
   0x4   :  { %21 = dma.hbm_to_vmem [thread:$0]  %s17_s14, 128, %s19_s16, [#allocation3]  }
   0x5   :  { %s220_s20 = smov [#allocation5]   ;;  %s221_s22 = smov 128  }
   0x6   :  { %s28_s21 = sshll.u32 %s220_s20, 4  ;;  %s222_s23 = smov 8   ;;  %s29_s21 = int_to_ptr.vmem [resolvable:$true] %s28_s21 }
   0x7   :  { %34 = dma.hbm_to_vmem [thread:$0]  %s27_s19, 512, %s29_s21, [#allocation6], %s221_s22, %s221_s22, %s222_s23  }
   0x8   :  { %213 = dma.done.wait [#allocation3], 128  }
   0x9   :  { %214 = vsyncadd [#allocation3], 4294967168 }
   0xa   :  { %215 = dma.done.wait [#allocation6], 512  }
   0xb   :  { %216 = vsyncadd [#allocation6], 4294966784  ;;  %v55_v0 = vld [vmem:[#allocation5 + $0x18] sm:$0xff]  ;;  %v54_v1 = vld [vmem:[#allocation5 + $0x10] sm:$0xff]  ;;  %vm56_vm0 = vcmask 261120   ;;  %s223_s24 = smov [#allocation7]  }
   0xc   :  { %72 = vmatpush.msra.mxu0 %v55_v0  ;;  %v53_v2 = vld [vmem:[#allocation5 + $0x8] sm:$0xff]  ;;  %v52_v3 = vld [vmem:[#allocation5] sm:$0xff]  ;;  %v51_v4 = vld [vmem:[#allocation2] sm:$0xff]  ;;  %s116_s25 = sshll.u32 %s223_s24, 4  ;;  %s117_s25 = int_to_ptr.vmem [resolvable:$true] %s116_s25 }
   0xd   :  { %v136_v5 = vld [vmem:[%s258_s2] ss:$0 sm:$0xff]  ;;  %s118_s2 = sshll.u32 %s259_s3, 4  ;;  %s119_s2 = int_to_ptr.hbm [resolvable:$true] %s118_s2 }
   0xe   :  { %73 = vmatpush.msra.mxu0 %v54_v1 }
  0x10   :  { %74 = vmatpush.msra.mxu0 %v53_v2 }
  0x12   :  { %75 = vmatpush.msra.mxu0 %v52_v3 }
  0x13   :  { %129 = vmatmul.msk.f32.vlgmr.msra.gmra.mxu0 %vm56_vm0, %v51_v4 }
  0x90   :  { %v77_v6 = vpop.f32.mrf.mxu0 }
  0x91   :  { %v90_v7 = vadd.f32 %v136_v5, %v77_v6 }
  0x93   :  { %v91_v8 = vsub.f32 0.0, %v90_v7 }
  0x95   :  { %v92_v9 = vmul.f32 1.442695, %v91_v8 }
  0x97   :  { %137 = vpow2.f32 %v92_v9 }
  0x9d   :  { %v138_v10 = vpop.eup %137 }
  0x9e   :  { %v94_v11 = vadd.f32 1.0, %v138_v10 }
  0xa0   :  { %139 = vrcp.f32 %v94_v11  ;;  %v106_v15 = vand.u32 2147483648, %v94_v11  ;;  %v104_v17 = vand.u32 2147483647, %v94_v11  ;;  %vm100_vm2 = vweird.f32 %v94_v11 }
  0xa2   :  { %v107_v19 = vor.u32 1.1754944e-38, %v106_v15  ;;  %vm105_vm4 = vcmp.eq.f32.partialorder %v104_v17, 8.507059e+37 }
  0xa6   :  { %v140_v12 = vpop.eup %139 }
  0xa7   :  { %v96_v13 = vmul.f32 %v140_v12, %v94_v11  ;;  %vm101_vm1 = vweird.f32 %v140_v12 }
  0xa8   :  { %vm102_vm3 = vmor %vm100_vm2, %vm101_vm1 }
  0xa9   :  { %v97_v14 = vsub.f32 1.0, %v96_v13 }
  0xab   :  { %v98_v16 = vmul.f32 %v140_v12, %v97_v14 }
  0xad   :  { %v99_v18 = vadd.f32 %v140_v12, %v98_v16 }
  0xaf   :  { %v103_v20 = vsel %vm102_vm3, %v140_v12, %v99_v18 }
  0xb0   :  { %v108_v21 = vsel %vm105_vm4, %v107_v19, %v103_v20 }
  0xb1   :  { %110 = vst [vmem:[#allocation7] sm:$0xff] %v108_v21 }
  0xb2   :  { %121 = dma.vmem_to_hbm [thread:$0]  %s117_s25, 128, %s119_s2, [#allocation4]  }
  0xb3   :  { %217 = dma.done.wait [#allocation4], 128  }
  0xb4   :  { %218 = vsyncadd [#allocation4], 4294967168 }
  0xb5   :  { %126 = vsyncpa [#allocation3], 1 }
  0xb6   :  { %127 = vsyncpa [#allocation6], 1 }
  0xb7   :  { %128 = vsyncpa [#allocation4], 1 }

</bundles_post_ra>
